<compile_context>
chip_gen: v5e
topology: v5e:2x2
jax: 0.10.0
libtpu: 0.0.40
codegen_flags: <defaults>
</compile_context>

<pallas_src>
import functools

import numpy as np
import jax
import jax.numpy as jnp
from jax.experimental import pallas as pl
from jax.experimental.pallas import tpu as pltpu


# ----------------------------------------------------------------------------
# Fused Pallas kernel: whole ResidualBlock2, batch folded into the lane axis
# ----------------------------------------------------------------------------
def _residual_block2_kernel(mask_ref, x_ref,
                            a1_ref, ba1_ref, bt1_ref, bc1_ref, wp1_ref, bp1_ref,
                            a2_ref, ba2_ref, bt2_ref, bc2_ref, wp2_ref, bp2_ref,
                            wd_ref, bd_ref,
                            o_ref,
                            *, W, split1, split2, roll_like_jnp):
    f32 = jnp.float32
    mx = a1_ref.dtype                       # MXU operand dtype (bf16 by default)
    L = o_ref.shape[-1]                     # lanes = N * H * W

    masks = mask_ref[...]                   # (9, L) 1.0/0.0 tap-validity masks (per image)
    big = jnp.float32(1e30)
    # -inf-style additive pads for the separable max pool
    # (mask rows 3/5/1/7 = left / right / up / down neighbor validity)
    pp_l = (masks[3:4, :] - 1.0) * big
    pp_r = (masks[5:6, :] - 1.0) * big
    pp_u = (masks[1:2, :] - 1.0) * big
    pp_d = (masks[7:8, :] - 1.0) * big

    offs = [oy * W + ox for oy in (-1, 0, 1) for ox in (-1, 0, 1)]

    def shifted(v, off):
        # shifted[:, s] == v[:, (s + off) mod L]; wrapped lanes are killed by the masks/pads.
        if off % L == 0:
            return v
        shift = (-off) % L if roll_like_jnp else off % L
        return pltpu.roll(v, shift, 1)

    def relu(v):
        return jnp.maximum(v, 0.0)

    def maxpool3s1(v):
        # 3x3 / stride-1 / "same" max pool, separable: 1x3 pass then 3x1 pass (4 rolls).
        h = jnp.maximum(v, jnp.maximum(shifted(v, -1) + pp_l, shifted(v, 1) + pp_r))
        return jnp.maximum(h, jnp.maximum(shifted(h, -W) + pp_u, shifted(h, W) + pp_d))

    def inception(xin, a_ref, ba_ref, bt_ref, bc_ref, wp_ref, bp_ref, split):
        # Stage A: merged 1x1 convs [branch1 | 3x3-reduce | "5x5"-reduce] in one MXU dot.
        m = relu(jnp.dot(a_ref[...], xin.astype(mx), preferred_element_type=f32)
                 + ba_ref[...])
        rcat = m[split:, :]                                 # (Cr, L) reduce outputs, f32
        # Stage B (conv part): both 3x3 convs via per-tap accumulation with block-diagonal
        # tap weights; only the Cr reduce rows are rolled, masking kills wrapped taps.
        acc = None
        for k in range(9):
            piece = rcat if offs[k] == 0 else shifted(rcat, offs[k]) * masks[k:k + 1, :]
            contrib = jnp.dot(bt_ref[k], piece.astype(mx), preferred_element_type=f32)
            acc = contrib if acc is None else acc + contrib
        y_conv = relu(acc + bc_ref[...])                    # [branch2 3x3 | branch3 "5x5"]
        # Stage B (pool branch): 3x3/s1 max pool of xin (f32), then 1x1 projection.
        pooled = maxpool3s1(xin)
        y_pool = relu(jnp.dot(wp_ref[...], pooled.astype(mx),
                              preferred_element_type=f32) + bp_ref[...])
        return jnp.concatenate([m[:split, :], y_conv, y_pool], axis=0)

    xin = x_ref[...]                                        # (Cin0, L) f32
    y = inception(xin, a1_ref, ba1_ref, bt1_ref, bc1_ref, wp1_ref, bp1_ref, split1)
    y = inception(y, a2_ref, ba2_ref, bt2_ref, bc2_ref, wp2_ref, bp2_ref, split2)
    # downsample (1x1 conv + folded BN + ReLU), then residual add + final ReLU
    d = relu(jnp.dot(wd_ref[...], y.astype(mx), preferred_element_type=f32) + bd_ref[...])
    o_ref[...] = relu(d + xin)


# ----------------------------------------------------------------------------
# pltpu.roll direction probe (tiny one-off kernel; makes the shift convention
# independent of the roll direction convention of the backend).
# ----------------------------------------------------------------------------
def _roll_probe_kernel(x_ref, o_ref):
    o_ref[...] = pltpu.roll(x_ref[...], 1, 1)


def probe_roll_direction():
    """Returns True iff pltpu.roll matches jnp.roll (out[i] = in[(i - shift) % n])."""
    x = jnp.tile(jnp.arange(128, dtype=jnp.float32)[None, :], (8, 1))
    y = pl.pallas_call(
        _roll_probe_kernel,
        out_shape=jax.ShapeDtypeStruct((8, 128), jnp.float32))(x)
    return bool(y[0, 0] == 127.0)


# ----------------------------------------------------------------------------
# Wrapper: one pallas_call for the whole block, batch folded into lanes
# ----------------------------------------------------------------------------
def _build_tap_masks(N, H, W):
    """(9, N*H*W) f32: validity of each 3x3 tap at every lane (batch folded into lanes)."""
    s = np.arange(N * H * W)
    hh = (s % (H * W)) // W
    ww = s % W
    rows = []
    for oy in (-1, 0, 1):
        for ox in (-1, 0, 1):
            valid = (hh + oy >= 0) & (hh + oy < H) & (ww + ox >= 0) & (ww + ox < W)
            rows.append(valid.astype(np.float32))
    return np.stack(rows, axis=0)


def _zero_index_map(nd):
    return lambda i: (0,) * nd


@functools.partial(jax.jit, static_argnames=("split1", "split2", "roll_like_jnp"))
def _residual_block2_pallas(x_nchw,
                            a1, ba1, bt1, bc1, wp1, bp1,
                            a2, ba2, bt2, bc2, wp2, bp2,
                            wd, bd,
                            *, split1, split2, roll_like_jnp):
    N, C, H, W = x_nchw.shape
    HW = H * W
    L = N * HW
    # Fold batch into the lane axis: (N, C, H, W) -> (C, N*H*W). Tiny one-off transposes.
    x2 = jnp.transpose(x_nchw.reshape(N, C, HW).astype(jnp.float32),
                       (1, 0, 2)).reshape(C, L)
    masks = jnp.asarray(_build_tap_masks(N, H, W))           # trace-time constant (9, L)

    kernel = functools.partial(_residual_block2_kernel, W=W,
                               split1=split1, split2=split2,
                               roll_like_jnp=roll_like_jnp)
    params = (a1, ba1, bt1, bc1, wp1, bp1, a2, ba2, bt2, bc2, wp2, bp2, wd, bd)
    out = pl.pallas_call(
        kernel,
        out_shape=jax.ShapeDtypeStruct((C, L), jnp.float32),
        grid=(1,),
        in_specs=[pl.BlockSpec(masks.shape, _zero_index_map(2)),
                  pl.BlockSpec((C, L), _zero_index_map(2))]
                 + [pl.BlockSpec(p.shape, _zero_index_map(p.ndim)) for p in params],
        out_specs=pl.BlockSpec((C, L), _zero_index_map(2)),
        compiler_params=pltpu.CompilerParams(
            dimension_semantics=("arbitrary",)),
    )(masks, x2, *params)
    return jnp.transpose(out.reshape(C, N, HW), (1, 0, 2)).reshape(N, C, H, W)


def residual_block2_forward(x_nchw, fused, *, roll_like_jnp=True):
    f1, f2 = fused["inc1"], fused["inc2"]
    return _residual_block2_pallas(
        x_nchw,
        f1["A"], f1["bA"], f1["Bt"], f1["bBc"], f1["Wp"], f1["bp"],
        f2["A"], f2["bA"], f2["Bt"], f2["bBc"], f2["Wp"], f2["bp"],
        fused["wd"], fused["bd"],
        split1=f1["split"], split2=f2["split"], roll_like_jnp=roll_like_jnp)


# ----------------------------------------------------------------------------
# Parameter init (deterministic) + BN folding + branch fusion / bf16 prep
# ----------------------------------------------------------------------------
def init_basic_conv(key, cin, cout, k):
    """Conv2d(bias=False) + BatchNorm2d(eps=1e-3, eval mode) folded to (w, b)."""
    kw, kg, kb = jax.random.split(key, 3)
    fan_in = cin * k * k
    w = jax.random.normal(kw, (cout, cin, k, k), jnp.float32) / jnp.sqrt(fan_in)
    gamma = 1.0 + 0.1 * jax.random.normal(kg, (cout,), jnp.float32)
    beta = 0.1 * jax.random.normal(kb, (cout,), jnp.float32)
    running_mean = jnp.zeros((cout,), jnp.float32)
    running_var = jnp.ones((cout,), jnp.float32)
    eps = 1e-3
    scale = gamma / jnp.sqrt(running_var + eps)
    bias = beta - running_mean * scale
    return {"w": w * scale[:, None, None, None], "b": bias}


def init_inception(key, cin, ch1x1, red3, ch3, red5, ch5, pool_proj):
    ks = jax.random.split(key, 6)
    return {
        "b1":  init_basic_conv(ks[0], cin, ch1x1, 1),
        "b2a": init_basic_conv(ks[1], cin, red3, 1),
        "b2b": init_basic_conv(ks[2], red3, ch3, 3),
        "b3a": init_basic_conv(ks[3], cin, red5, 1),
        "b3b": init_basic_conv(ks[4], red5, ch5, 3),   # torchvision: 3x3 for "ch5x5"
        "b4":  init_basic_conv(ks[5], cin, pool_proj, 1),
    }


def init_residual_block2(key, params1, params2):
    k1, k2, k3 = jax.random.split(key, 3)
    out2 = params2[0] + params2[2] + params2[4] + params2[5]
    return {
        "inc1": init_inception(k1, *params1),
        "inc2": init_inception(k2,
                               params1[1] + params1[3] + params1[5] + params1[6],
                               *params2),
        "down": init_basic_conv(k3, out2, params1[0], 1),
    }


def _fuse_inception(p, cin, ch1x1, red3, ch3, red5, ch5, pool_proj,
                    mxu_dtype=jnp.bfloat16):
    """Build the merged / per-tap matmul operands for one Inception block."""
    # Stage A: merged 1x1 on x, rows ordered [branch1 | branch2-reduce | branch3-reduce].
    A = jnp.concatenate([p["b1"]["w"][:, :, 0, 0],
                         p["b2a"]["w"][:, :, 0, 0],
                         p["b3a"]["w"][:, :, 0, 0]], axis=0)          # (ch1x1+red3+red5, cin)
    bA = jnp.concatenate([p["b1"]["b"], p["b2a"]["b"], p["b3a"]["b"]])[:, None]
    # Stage B per-tap weights: (9, ch3+ch5, red3+red5), block-diagonal [ [w3_k, 0], [0, w5_k] ]
    taps = []
    for ky in range(3):
        for kx in range(3):
            w3 = p["b2b"]["w"][:, :, ky, kx]                          # (ch3, red3)
            w5 = p["b3b"]["w"][:, :, ky, kx]                          # (ch5, red5)
            top = jnp.concatenate([w3, jnp.zeros((ch3, red5), jnp.float32)], axis=1)
            bot = jnp.concatenate([jnp.zeros((ch5, red3), jnp.float32), w5], axis=1)
            taps.append(jnp.concatenate([top, bot], axis=0))
    Bt = jnp.stack(taps, axis=0)
    bBc = jnp.concatenate([p["b2b"]["b"], p["b3b"]["b"]])[:, None]
    Wp = p["b4"]["w"][:, :, 0, 0]                                     # (pool_proj, cin)
    bp = p["b4"]["b"][:, None]
    return {"A": A.astype(mxu_dtype), "bA": bA,
            "Bt": Bt.astype(mxu_dtype), "bBc": bBc,
            "Wp": Wp.astype(mxu_dtype), "bp": bp,
            "split": int(ch1x1)}


def prepare_fused(params, params1, params2, mxu_dtype=jnp.bfloat16):
    cin1 = params1[0]
    out1 = params1[1] + params1[3] + params1[5] + params1[6]
    return {
        "inc1": _fuse_inception(params["inc1"], cin1, *params1[1:], mxu_dtype=mxu_dtype),
        "inc2": _fuse_inception(params["inc2"], out1, *params2, mxu_dtype=mxu_dtype),
        "wd": params["down"]["w"][:, :, 0, 0].astype(mxu_dtype),
        "bd": params["down"]["b"][:, None],
    }


# ----------------------------------------------------------------------------
# Pure-JAX reference (lax.conv / reduce_window) for correctness validation.
# mxu_dtype=None -> strict f32 reference; mxu_dtype=bf16 -> emulates the kernel's
# bf16-operand / f32-accumulate matmuls (structure check with tight tolerance).
# ----------------------------------------------------------------------------
def _conv_bn_relu_ref(x, w, b, mxu_dtype=None):
    if mxu_dtype is not None:
        x = x.astype(mxu_dtype).astype(jnp.float32)
        w = w.astype(mxu_dtype).astype(jnp.float32)
    k = w.shape[-1]
    pad = (k - 1) // 2
    y = jax.lax.conv_general_dilated(
        x, w, window_strides=(1, 1), padding=((pad, pad), (pad, pad)),
        dimension_numbers=("NCHW", "OIHW", "NCHW"),
        precision=jax.lax.Precision.HIGHEST)
    return jnp.maximum(y + b[None, :, None, None], 0.0)


def _maxpool3s1_ref(x):
    return jax.lax.reduce_window(
        x, -jnp.inf, jax.lax.max,
        window_dimensions=(1, 1, 3, 3), window_strides=(1, 1, 1, 1),
        padding=((0, 0), (0, 0), (1, 1), (1, 1)))


def _inception_ref(x, p, mxu_dtype=None):
    b1 = _conv_bn_relu_ref(x, p["b1"]["w"], p["b1"]["b"], mxu_dtype)
    b2 = _conv_bn_relu_ref(x, p["b2a"]["w"], p["b2a"]["b"], mxu_dtype)
    b2 = _conv_bn_relu_ref(b2, p["b2b"]["w"], p["b2b"]["b"], mxu_dtype)
    b3 = _conv_bn_relu_ref(x, p["b3a"]["w"], p["b3a"]["b"], mxu_dtype)
    b3 = _conv_bn_relu_ref(b3, p["b3b"]["w"], p["b3b"]["b"], mxu_dtype)
    b4 = _conv_bn_relu_ref(_maxpool3s1_ref(x), p["b4"]["w"], p["b4"]["b"], mxu_dtype)
    return jnp.concatenate([b1, b2, b3, b4], axis=1)


def residual_block2_ref(x, params, mxu_dtype=None):
    r = x
    y = _inception_ref(x, params["inc1"], mxu_dtype)
    y = _inception_ref(y, params["inc2"], mxu_dtype)
    y = _conv_bn_relu_ref(y, params["down"]["w"], params["down"]["b"], mxu_dtype)
    return jnp.maximum(y + r, 0.0)


# ----------------------------------------------------------------------------
if __name__ == "__main__":
    key = jax.random.PRNGKey(0)
    kx, kp = jax.random.split(key)

    # params1 = [in_ch, ch1x1, ch3x3red, ch3x3, ch5x5red, ch5x5, pool_proj]
    params1 = [4, 8, 4, 8, 4, 8, 8]    # out1 = 32
    # params2 = [ch1x1, ch3x3red, ch3x3, ch5x5red, ch5x5, pool_proj]
    params2 = [8, 4, 8, 4, 8, 8]       # out2 = 32; downsample: 32 -> 4

    x = jax.random.normal(kx, (2, 4, 16, 16), jnp.float32)   # NCHW like PyTorch
    params = init_residual_block2(kp, params1, params2)
    fused = prepare_fused(params, params1, params2, mxu_dtype=jnp.bfloat16)

    roll_like_jnp = probe_roll_direction()
    out = residual_block2_forward(x, fused, roll_like_jnp=roll_like_jnp)
    out = jax.block_until_ready(out)
    assert out.shape == x.shape, out.shape

    # Structure check (tight): reference emulating the kernel's bf16-operand matmuls.
    ref_emul = residual_block2_ref(x, params, mxu_dtype=jnp.bfloat16)
    err_emul = float(jnp.max(jnp.abs(out - ref_emul)))
    assert err_emul < 3e-2, f"max |pallas - bf16-emulated reference| = {err_emul}"

    # Numerics check (bf16-MXU tolerance) against the strict f32 reference.
    ref_f32 = residual_block2_ref(x, params)
    err_f32 = float(jnp.max(jnp.abs(out - ref_f32)))
    assert err_f32 < 2.5e-1, f"max |pallas - f32 reference| = {err_f32}"

    assert bool(jnp.all(out >= 0.0))   # final ReLU
    print("KERNEL_OK")
</pallas_src>

<mosaic_0001>
module attributes {stable_mosaic.version = 11 : i64} {
  func.func @_roll_probe_kernel(%arg0: memref<8x128xf32, #tpu.memory_space<vmem>>, %arg1: memref<8x128xf32, #tpu.memory_space<vmem>>) attributes {dimension_semantics = [], scalar_prefetch = 0 : i64, scratch_operands = 0 : i64, tpu.core_type = #tpu.core_type<tc>} {
    %c0 = arith.constant 0 : index
    %c0_0 = arith.constant 0 : index
    %0 = vector.load %arg0[%c0, %c0_0] : memref<8x128xf32, #tpu.memory_space<vmem>>, vector<8x128xf32>
    %c1_i32 = arith.constant 1 : i32
    %1 = tpu.dynamic_rotate %0 by %c1_i32 dim 1 : vector<8x128xf32>, i32 -> vector<8x128xf32>
    %c0_1 = arith.constant 0 : index
    %c0_2 = arith.constant 0 : index
    %2 = vector.load %arg1[%c0_1, %c0_2] : memref<8x128xf32, #tpu.memory_space<vmem>>, vector<8x128xf32>
    tpu.vector_store %arg1[%c0_1, %c0_2], %1 {strides = array<i32>} : memref<8x128xf32, #tpu.memory_space<vmem>>, vector<8x128xf32>,
    return
  }
}

</mosaic_0001>

<bundles_post_ra>
// kernel: tpu_custom_call.1
= control target key start
LH: loop header
LB: loop body
LE: loop exit
PB: predicated region body
PF: predicated region fallthrough
CT: control target
= control target key end

     0   :  { %6 = vsyncpa [#allocation3], 0  ;;  %s118_s0 = inlined_call_operand.hbm [shape: f32[8,128], index: 0, kind: input, shape index: {}]   ;;  %s119_s1 = inlined_call_operand.hbm [shape: f32[8,128], index: 1, kind: output, shape index: {}]  }
   0x1   :  { %7 = vsyncpa [#allocation4], 0  ;;  %s13_s8 = sshll.u32 %s118_s0, 4  ;;  %s99_s9 = smov [#allocation2]   ;;  %s14_s8 = int_to_ptr.hbm [resolvable:$true] %s13_s8 }
   0x2   :  { %s15_s10 = sshll.u32 %s99_s9, 4  ;;  %s16_s10 = int_to_ptr.vmem [resolvable:$true] %s15_s10 }
   0x3   :  { %18 = dma.hbm_to_vmem [thread:$0]  %s14_s8, 128, %s16_s10, [#allocation3]  }
   0x4   :  { %95 = dma.done.wait [#allocation3], 128  }
   0x5   :  { %96 = vsyncadd [#allocation3], 4294967168  ;;  %v23_v0 = vld [vmem:[#allocation2] sm:$0xff]  ;;  %s100_s11 = smov 1   ;;  %s101_s12 = smov [#allocation5]  }
   0x6   :  { %24 = vrot.lane.b32.xlu0 %v23_v0, %s100_s11  ;;  %s32_s13 = sshll.u32 %s101_s12, 4  ;;  %s34_s16 = sshll.u32 %s119_s1, 4  ;;  %s33_s13 = int_to_ptr.vmem [resolvable:$true] %s32_s13  ;;  %s35_s16 = int_to_ptr.hbm [resolvable:$true] %s34_s16 }
  0x78   :  { %v25_v1 = vpop.permute.xlu0 %24 }
  0x79   :  { %26 = vst [vmem:[#allocation5] sm:$0xff] %v25_v1 }
  0x7a   :  { %37 = dma.vmem_to_hbm [thread:$0]  %s33_s13, 128, %s35_s16, [#allocation4]  }
  0x7b   :  { %97 = dma.done.wait [#allocation4], 128  }
  0x7c   :  { %98 = vsyncadd [#allocation4], 4294967168 }
  0x7d   :  { %42 = vsyncpa [#allocation3], 1 }
  0x7e   :  { %43 = vsyncpa [#allocation4], 1 }

</bundles_post_ra>
